<compile_context>
chip_gen: v7x
topology: tpu7x:2x2x1
jax: 0.10.0
libtpu: 0.0.40
codegen_flags: <defaults>
</compile_context>

<pallas_src>
import jax
import jax.numpy as jnp
from jax.experimental import pallas as pl
from jax.experimental.pallas import tpu as pltpu

LANE = 128          # vreg lane width / MXU-friendly padding target
BATCH_TILE = 512    # default batch tile (fits easily in VMEM on v5e/v6e/v7x)


def _round_up(n, m):
    return ((n + m - 1) // m) * m


def mlp_kernel(x_ref, w1_ref, b1_ref, w2_ref, b2_ref, o_ref):
    # fc1 on the MXU, f32 accumulate: (TB, in_p) @ (in_p, hid_p)
    h = jnp.dot(x_ref[...], w1_ref[...], preferred_element_type=jnp.float32)
    # bias add + sigmoid; jax.nn.sigmoid lowers to logistic (EUP slot)
    h = jax.nn.sigmoid(h + b1_ref[...])
    # fc2 on the MXU (cast activation back to operand dtype), f32 accumulate
    out = jnp.dot(h.astype(w2_ref.dtype), w2_ref[...],
                  preferred_element_type=jnp.float32)
    o_ref[...] = (out + b2_ref[...]).astype(o_ref.dtype)


def net_forward(x, w1, b1, w2, b2, *, batch_tile=BATCH_TILE,
                operand_dtype=jnp.bfloat16):
    """x: (B, inputSize); w1: (inputSize, 64); b1: (1, 64);
       w2: (64, outputSize); b2: (1, outputSize). Returns (B, outputSize)."""
    B, in_dim = x.shape
    hidden = w1.shape[1]
    out_dim = w2.shape[1]

    # Pad feature dims to the 128-lane width; pad batch to the tile.
    in_p = _round_up(in_dim, LANE)
    hid_p = _round_up(hidden, LANE)
    out_p = _round_up(out_dim, LANE)
    tb = min(batch_tile, _round_up(B, 16))   # 16-row align (bf16 sublane pack)
    b_p = _round_up(B, tb)

    x_p = jnp.zeros((b_p, in_p), operand_dtype).at[:B, :in_dim].set(
        x.astype(operand_dtype))
    w1_p = jnp.zeros((in_p, hid_p), operand_dtype).at[:in_dim, :hidden].set(
        w1.astype(operand_dtype))
    b1_p = jnp.zeros((1, hid_p), jnp.float32).at[:, :hidden].set(
        b1.astype(jnp.float32))
    w2_p = jnp.zeros((hid_p, out_p), operand_dtype).at[:hidden, :out_dim].set(
        w2.astype(operand_dtype))
    b2_p = jnp.zeros((1, out_p), jnp.float32).at[:, :out_dim].set(
        b2.astype(jnp.float32))

    grid = (b_p // tb,)

    out_padded = pl.pallas_call(
        mlp_kernel,
        out_shape=jax.ShapeDtypeStruct((b_p, out_p), x.dtype),
        grid_spec=pl.GridSpec(
            grid=grid,
            in_specs=[
                pl.BlockSpec((tb, in_p), lambda i: (i, 0)),      # x: per-tile
                pl.BlockSpec((in_p, hid_p), lambda i: (0, 0)),   # w1: resident
                pl.BlockSpec((1, hid_p), lambda i: (0, 0)),      # b1: resident
                pl.BlockSpec((hid_p, out_p), lambda i: (0, 0)),  # w2: resident
                pl.BlockSpec((1, out_p), lambda i: (0, 0)),      # b2: resident
            ],
            out_specs=pl.BlockSpec((tb, out_p), lambda i: (i, 0)),
        ),
        compiler_params=pltpu.CompilerParams(
            dimension_semantics=("parallel",),
            vmem_limit_bytes=64 * 1024 * 1024,
        ),
    )(x_p, w1_p, b1_p, w2_p, b2_p)

    return out_padded[:B, :out_dim]


def init_params(key, input_size, hidden, output_size, dtype=jnp.float32):
    # Deterministic init mimicking nn.Linear default (uniform +/- 1/sqrt(fan_in)).
    k1, k2, k3, k4 = jax.random.split(key, 4)
    bound1 = 1.0 / jnp.sqrt(input_size)
    bound2 = 1.0 / jnp.sqrt(hidden)
    w1 = jax.random.uniform(k1, (input_size, hidden), dtype, -bound1, bound1)
    b1 = jax.random.uniform(k2, (1, hidden), dtype, -bound1, bound1)
    w2 = jax.random.uniform(k3, (hidden, output_size), dtype, -bound2, bound2)
    b2 = jax.random.uniform(k4, (1, output_size), dtype, -bound2, bound2)
    return w1, b1, w2, b2


if __name__ == "__main__":
    key = jax.random.PRNGKey(0)
    kx, kp = jax.random.split(key)

    B = 8            # batch
    INPUT_SIZE = 32  # inputSize
    HIDDEN = 64      # fixed by the module
    OUTPUT_SIZE = 4  # outputSize

    x = jax.random.normal(kx, (B, INPUT_SIZE), jnp.float32)
    w1, b1, w2, b2 = init_params(kp, INPUT_SIZE, HIDDEN, OUTPUT_SIZE)

    out = net_forward(x, w1, b1, w2, b2)
    out = jax.block_until_ready(out)

    # Reference in plain JAX for a sanity check (f32); bf16 MXU operands in the
    # kernel mean we compare with a relaxed tolerance.
    h_ref = jax.nn.sigmoid(x @ w1 + b1)
    out_ref = h_ref @ w2 + b2
    assert out.shape == (B, OUTPUT_SIZE)
    assert jnp.allclose(out, out_ref, atol=5e-2, rtol=5e-2), (
        float(jnp.max(jnp.abs(out - out_ref))))

    print("KERNEL_OK")
</pallas_src>

<mosaic_0001>
module attributes {stable_mosaic.version = 11 : i64} {
  func.func @mlp_kernel(%arg0: i32, %arg1: memref<16x128xbf16, #tpu.memory_space<vmem>>, %arg2: memref<128x128xbf16, #tpu.memory_space<vmem>>, %arg3: memref<1x128xf32, #tpu.memory_space<vmem>>, %arg4: memref<128x128xbf16, #tpu.memory_space<vmem>>, %arg5: memref<1x128xf32, #tpu.memory_space<vmem>>, %arg6: memref<16x128xf32, #tpu.memory_space<vmem>>) attributes {dimension_semantics = [#tpu.dimension_semantics<parallel>], iteration_bounds = array<i64: 1>, scalar_prefetch = 0 : i64, scratch_operands = 0 : i64, tpu.core_type = #tpu.core_type<tc>, window_params = [{transform_indices = @transform_0, window_bounds = array<i64: 16, 128>}, {pipeline_mode = #tpu.pipeline_mode<synchronous>, transform_indices = @transform_1, window_bounds = array<i64: 128, 128>}, {pipeline_mode = #tpu.pipeline_mode<synchronous>, transform_indices = @transform_2, window_bounds = array<i64: 1, 128>}, {pipeline_mode = #tpu.pipeline_mode<synchronous>, transform_indices = @transform_3, window_bounds = array<i64: 128, 128>}, {pipeline_mode = #tpu.pipeline_mode<synchronous>, transform_indices = @transform_4, window_bounds = array<i64: 1, 128>}, {transform_indices = @transform_5, window_bounds = array<i64: 16, 128>}]} {
    %c0 = arith.constant 0 : index
    %c0_0 = arith.constant 0 : index
    %0 = vector.load %arg1[%c0, %c0_0] : memref<16x128xbf16, #tpu.memory_space<vmem>>, vector<16x128xbf16>
    %c0_1 = arith.constant 0 : index
    %c0_2 = arith.constant 0 : index
    %1 = vector.load %arg2[%c0_1, %c0_2] : memref<128x128xbf16, #tpu.memory_space<vmem>>, vector<128x128xbf16>
    %cst = arith.constant dense<0.000000e+00> : vector<16x128xf32>
    %2 = tpu.matmul %0, %1, %cst {dimension_numbers = #tpu.dot_dimension_numbers<[1], [0], [0], [1], [0, 0, 1, 1], [], []>} : vector<16x128xbf16>, vector<128x128xbf16>, vector<16x128xf32> -> vector<16x128xf32>
    %c0_3 = arith.constant 0 : index
    %c0_4 = arith.constant 0 : index
    %3 = vector.load %arg3[%c0_3, %c0_4] : memref<1x128xf32, #tpu.memory_space<vmem>>, vector<1x128xf32>
    %4 = vector.broadcast %3 : vector<1x128xf32> to vector<16x128xf32>
    %5 = arith.addf %2, %4 : vector<16x128xf32>
    %6 = arith.negf %5 : vector<16x128xf32>
    %7 = math.exp %6 : vector<16x128xf32>
    %cst_5 = arith.constant 1.000000e+00 : f32
    %8 = vector.broadcast %cst_5 : f32 to vector<16x128xf32>
    %9 = arith.addf %8, %7 : vector<16x128xf32>
    %10 = arith.divf %8, %9 : vector<16x128xf32>
    %11 = arith.truncf %10 : vector<16x128xf32> to vector<16x128xbf16>
    %c0_6 = arith.constant 0 : index
    %c0_7 = arith.constant 0 : index
    %12 = vector.load %arg4[%c0_6, %c0_7] : memref<128x128xbf16, #tpu.memory_space<vmem>>, vector<128x128xbf16>
    %cst_8 = arith.constant dense<0.000000e+00> : vector<16x128xf32>
    %13 = tpu.matmul %11, %12, %cst_8 {dimension_numbers = #tpu.dot_dimension_numbers<[1], [0], [0], [1], [0, 0, 1, 1], [], []>} : vector<16x128xbf16>, vector<128x128xbf16>, vector<16x128xf32> -> vector<16x128xf32>
    %c0_9 = arith.constant 0 : index
    %c0_10 = arith.constant 0 : index
    %14 = vector.load %arg5[%c0_9, %c0_10] : memref<1x128xf32, #tpu.memory_space<vmem>>, vector<1x128xf32>
    %15 = vector.broadcast %14 : vector<1x128xf32> to vector<16x128xf32>
    %16 = arith.addf %13, %15 : vector<16x128xf32>
    %c0_11 = arith.constant 0 : index
    %c0_12 = arith.constant 0 : index
    %17 = vector.load %arg6[%c0_11, %c0_12] : memref<16x128xf32, #tpu.memory_space<vmem>>, vector<16x128xf32>
    tpu.vector_store %arg6[%c0_11, %c0_12], %16 {strides = array<i32>} : memref<16x128xf32, #tpu.memory_space<vmem>>, vector<16x128xf32>,
    return
  }
  func.func @transform_0(%arg0: i32) -> (i32, i32) {
    %c0_i32 = arith.constant 0 : i32
    %c0_i32_0 = arith.constant 0 : i32
    return %arg0, %c0_i32 : i32, i32
  }
  func.func @transform_1(%arg0: i32) -> (i32, i32) {
    %c0_i32 = arith.constant 0 : i32
    %c0_i32_0 = arith.constant 0 : i32
    %c0_i32_1 = arith.constant 0 : i32
    return %c0_i32, %c0_i32_0 : i32, i32
  }
  func.func @transform_2(%arg0: i32) -> (i32, i32) {
    %c0_i32 = arith.constant 0 : i32
    %c0_i32_0 = arith.constant 0 : i32
    %c0_i32_1 = arith.constant 0 : i32
    return %c0_i32, %c0_i32_0 : i32, i32
  }
  func.func @transform_3(%arg0: i32) -> (i32, i32) {
    %c0_i32 = arith.constant 0 : i32
    %c0_i32_0 = arith.constant 0 : i32
    %c0_i32_1 = arith.constant 0 : i32
    return %c0_i32, %c0_i32_0 : i32, i32
  }
  func.func @transform_4(%arg0: i32) -> (i32, i32) {
    %c0_i32 = arith.constant 0 : i32
    %c0_i32_0 = arith.constant 0 : i32
    %c0_i32_1 = arith.constant 0 : i32
    return %c0_i32, %c0_i32_0 : i32, i32
  }
  func.func @transform_5(%arg0: i32) -> (i32, i32) {
    %c0_i32 = arith.constant 0 : i32
    %c0_i32_0 = arith.constant 0 : i32
    return %arg0, %c0_i32 : i32, i32
  }
}

</mosaic_0001>

<bundles_post_ra>
// kernel: tpu_custom_call.1
= control target key start
LH: loop header
LB: loop body
LE: loop exit
PB: predicated region body
PF: predicated region fallthrough
CT: control target
= control target key end

     0   :  { %10 = vsyncpa [#allocation3], 0  ;;  %s738_s0 = inlined_call_operand.hbm [shape: bf16[16,128], index: 0, kind: input, shape index: {}]   ;;  %s739_s1 = inlined_call_operand.hbm [shape: bf16[128,128], index: 1, kind: input, shape index: {}]   ;;  %s740_s2 = inlined_call_operand.hbm [shape: f32[1,128], index: 2, kind: input, shape index: {}]   ;;  %s741_s3 = inlined_call_operand.hbm [shape: bf16[128,128], index: 3, kind: input, shape index: {}]   ;;  %s742_s4 = inlined_call_operand.hbm [shape: f32[1,128], index: 4, kind: input, shape index: {}]   ;;  %s743_s5 = inlined_call_operand.hbm [shape: f32[16,128], index: 5, kind: output, shape index: {}]  }
   0x1   :  { %11 = vsyncpa [#allocation6], 0 }
   0x2   :  { %12 = vsyncpa [#allocation9], 0 }
   0x3   :  { %13 = vsyncpa [#allocation4], 0  ;;  %s608_s18 = smov [#allocation5]   ;;  %s609_s20 = smov [#allocation8]  }
   0x4   :  { %s31_s19 = sshll.u32 %s608_s18, 4  ;;  %s53_s21 = sshll.u32 %s609_s20, 4  ;;  %s32_s19 = int_to_ptr.vmem [resolvable:$true] %s31_s19  ;;  %s650_s21 = int_to_ptr.vmem [resolvable:$true] %s53_s21 }
   0x5   :  { %s468_s24 = scalar_lea.hbm %s739_s1, 1024 }
   0x6   :  { %p469_p0 = scmp.ne.s32.totalorder %s739_s1, %s468_s24  ;;  %p472_p1 = scmp.lt.u32.totalorder %s468_s24, %s739_s1 }
   0x8   :  { %p474_p2 = pnand %p472_p1, %p469_p0 }
   0xa   :  { %477 = shalt.err (!%p474_p2)
}
   0xb   :  { %s478_s29 = scalar_lea.vmem %s32_s19, 1024  ;;  %p483_p4 = scmp.lt.s32.totalorder %s32_s19, %s32_s19 }
   0xc   :  { %p479_p3 = scmp.ne.s32.totalorder %s32_s19, %s478_s29  ;;  %p484_p5 = scmp.lt.s32.totalorder %s478_s29, %s478_s29 }
   0xe   :  { %p485_p6 = por %p484_p5, %p483_p4 }
  0x10   :  { %p486_p7 = pnand %p485_p6, %p479_p3 }
  0x12   :  { %489 = shalt.err (!%p486_p7)
}
  0x13   :  { %s610_s30 = smov 64   ;;  %s611_s6 = smov 4  }
  0x14   :  { %37 = dma.hbm_to_vmem [thread:$0]  %s739_s1, 1024, %s32_s19, [#allocation6], %s610_s30, %s610_s30, %s611_s6  }
  0x15   :  { %s490_s11 = scalar_lea.hbm %s741_s3, 1024 }
  0x16   :  { %p491_p8 = scmp.ne.s32.totalorder %s741_s3, %s490_s11  ;;  %p494_p9 = scmp.lt.u32.totalorder %s490_s11, %s741_s3 }
  0x18   :  { %p496_p10 = pnand %p494_p9, %p491_p8 }
  0x1a   :  { %499 = shalt.err (!%p496_p10)
}
  0x1b   :  { %s500_s16 = scalar_lea.vmem %s650_s21, 1024  ;;  %p505_p12 = scmp.lt.s32.totalorder %s650_s21, %s650_s21 }
  0x1c   :  { %p501_p11 = scmp.ne.s32.totalorder %s650_s21, %s500_s16  ;;  %p506_p13 = scmp.lt.s32.totalorder %s500_s16, %s500_s16 }
  0x1e   :  { %p507_p0 = por %p506_p13, %p505_p12 }
  0x20   :  { %p508_p1 = pnand %p507_p0, %p501_p11 }
  0x22   :  { %511 = shalt.err (!%p508_p1)
}
  0x23   :  { %59 = dma.hbm_to_vmem [thread:$0]  %s741_s3, 1024, %s650_s21, [#allocation9], %s610_s30, %s610_s30, %s611_s6  }
  0x24   :  { %s612_s18 = smov [#allocation2]   ;;  %s613_s20 = smov [#allocation7]  }
  0x25   :  { %s19_s19 = sshll.u32 %s612_s18, 4  ;;  %s44_s22 = sshll.u32 %s613_s20, 4  ;;  %s20_s19 = int_to_ptr.vmem [resolvable:$true] %s19_s19  ;;  %s45_s22 = int_to_ptr.vmem [resolvable:$true] %s44_s22 }
  0x26   :  { %s512_s25 = scalar_lea.hbm %s738_s0, 128 }
  0x27   :  { %p513_p2 = scmp.ne.s32.totalorder %s738_s0, %s512_s25  ;;  %p516_p3 = scmp.lt.u32.totalorder %s512_s25, %s738_s0 }
  0x29   :  { %p518_p4 = pnand %p516_p3, %p513_p2 }
  0x2b   :  { %521 = shalt.err (!%p518_p4)
}
  0x2c   :  { %s522_s3 = scalar_lea.vmem %s20_s19, 128  ;;  %p527_p6 = scmp.lt.s32.totalorder %s20_s19, %s20_s19 }
  0x2d   :  { %p523_p5 = scmp.ne.s32.totalorder %s20_s19, %s522_s3  ;;  %p528_p7 = scmp.lt.s32.totalorder %s522_s3, %s522_s3 }
  0x2f   :  { %p529_p8 = por %p528_p7, %p527_p6 }
  0x31   :  { %p530_p9 = pnand %p529_p8, %p523_p5 }
  0x33   :  { %533 = shalt.err (!%p530_p9)
}
  0x34   :  { %25 = dma.hbm_to_vmem [thread:$0]  %s738_s0, 128, %s20_s19, [#allocation3], %s610_s30, %s610_s30, %s611_s6  }
  0x35   :  { %s534_s10 = scalar_lea.hbm %s740_s2, 16 }
  0x36   :  { %p535_p10 = scmp.ne.s32.totalorder %s740_s2, %s534_s10  ;;  %p538_p11 = scmp.lt.u32.totalorder %s534_s10, %s740_s2 }
  0x38   :  { %p540_p12 = pnand %p538_p11, %p535_p10 }
  0x3a   :  { %543 = shalt.err (!%p540_p12)
}
  0x3b   :  { %s544_s15 = scalar_lea.vmem %s45_s22, 16  ;;  %s548_s16 = scalar_lea.vmem %s45_s22, 32 }
  0x3c   :  { %p545_p13 = scmp.ne.s32.totalorder %s45_s22, %s544_s15  ;;  %p549_p0 = scmp.lt.s32.totalorder %s45_s22, %s45_s22 }
  0x3d   :  { %p550_p1 = scmp.lt.s32.totalorder %s548_s16, %s544_s15 }
  0x3f   :  { %p551_p2 = por %p550_p1, %p549_p0 }
  0x41   :  { %p552_p3 = pnand %p551_p2, %p545_p13 }
  0x43   :  { %555 = shalt.err (!%p552_p3)
}
  0x44   :  { %47 = dma.hbm_to_vmem [thread:$0]  %s740_s2, 16, %s45_s22, [#allocation6]  }
  0x45   :  { %s614_s6 = smov [#allocation10]   ;;  %s556_s19 = scalar_lea.hbm %s742_s4, 16 }
  0x46   :  { %s66_s1 = sshll.u32 %s614_s6, 4  ;;  %p557_p4 = scmp.ne.s32.totalorder %s742_s4, %s556_s19  ;;  %s67_s1 = int_to_ptr.vmem [resolvable:$true] %s66_s1 }
  0x47   :  { %p560_p5 = scmp.lt.u32.totalorder %s556_s19, %s742_s4 }
  0x49   :  { %p562_p6 = pnand %p560_p5, %p557_p4 }
  0x4b   :  { %565 = shalt.err (!%p562_p6)
}
  0x4c   :  { %s566_s26 = scalar_lea.vmem %s67_s1, 16  ;;  %s570_s2 = scalar_lea.vmem %s67_s1, 32 }
  0x4d   :  { %p567_p7 = scmp.ne.s32.totalorder %s67_s1, %s566_s26  ;;  %p571_p8 = scmp.lt.s32.totalorder %s67_s1, %s67_s1 }
  0x4e   :  { %p572_p9 = scmp.lt.s32.totalorder %s570_s2, %s566_s26 }
  0x50   :  { %p573_p10 = por %p572_p9, %p571_p8 }
  0x52   :  { %p574_p11 = pnand %p573_p10, %p567_p7 }
  0x54   :  { %577 = shalt.err (!%p574_p11)
}
  0x55   :  { %69 = dma.hbm_to_vmem [thread:$0]  %s742_s4, 16, %s67_s1, [#allocation9]  }
  0x56   :  { %600 = dma.done.wait [#allocation3], 128  }
  0x57   :  { %601 = vsyncadd [#allocation3], 4294967168 }
  0x58   :  { %602 = dma.done.wait [#allocation6], 1040  }
  0x59   :  { %603 = vsyncadd [#allocation6], 4294966256 }
  0x5a   :  { %604 = dma.done.wait [#allocation9], 1040  }
  0x5b   :  { %605 = vsyncadd [#allocation9], 4294966256  ;;  %v615_v0 = vmov 0.0   ;;  %vm616_vm0 = vmmov 0   ;;  %v443_v1 = vld [vmem:[#allocation5] sm:$0xff]   ;;  %v444_v2 = vld [vmem:[#allocation5 + $0x8] sm:$0xff]  }
  0x5c   :  { %391 = vmatprep.subr.bf16.mxu0 %v615_v0  ;;  %407 = vmatprep.mubr.msk.bf16.mxu0 %vm616_vm0, %v615_v0  ;;  %v445_v3 = vld [vmem:[#allocation5 + $0x10] sm:$0xff]   ;;  %v446_v4 = vld [vmem:[#allocation5 + $0x18] sm:$0xff]   ;;  %v447_v5 = vld [vmem:[#allocation5 + $0x20] sm:$0xff]   ;;  %s617_s4 = smov [#allocation11]  }
  0x5d   :  { %411 = vmatprep.subr.bf16.mxu1 %v615_v0  ;;  %427 = vmatprep.mubr.msk.bf16.mxu1 %vm616_vm0, %v615_v0  ;;  %v448_v6 = vld [vmem:[#allocation5 + $0x28] sm:$0xff]   ;;  %v449_v7 = vld [vmem:[#allocation5 + $0x30] sm:$0xff]   ;;  %v450_v8 = vld [vmem:[#allocation5 + $0x38] sm:$0xff]   ;;  %s338_s28 = sshll.u32 %s617_s4, 4  ;;  %s339_s28 = int_to_ptr.vmem [resolvable:$true] %s338_s28 }
  0x5e   :  { %392 = vmatpush3.bf16.msra.mxu0 %v443_v1  ;;  %v451_v9 = vld [vmem:[#allocation2] sm:$0xff]   ;;  %v452_v10 = vld [vmem:[#allocation8] sm:$0xff]   ;;  %v453_v11 = vld [vmem:[#allocation8 + $0x8] sm:$0xff]   ;;  %s578_s29 = scalar_lea.vmem %s339_s28, 256  ;;  %p583_p13 = scmp.lt.s32.totalorder %s339_s28, %s339_s28 }
  0x5f   :  { %393 = vmatprep.subr.bf16.mxu0 %v615_v0  ;;  %412 = vmatpush3.bf16.msra.mxu1 %v452_v10  ;;  %v454_v12 = vld [vmem:[#allocation8 + $0x10] sm:$0xff]   ;;  %v455_v13 = vld [vmem:[#allocation8 + $0x18] sm:$0xff]   ;;  %v456_v14 = vld [vmem:[#allocation8 + $0x20] sm:$0xff]   ;;  %p579_p12 = scmp.ne.s32.totalorder %s339_s28, %s578_s29  ;;  %p584_p0 = scmp.lt.s32.totalorder %s578_s29, %s578_s29 }
  0x60   :  { %413 = vmatprep.subr.bf16.mxu1 %v615_v0  ;;  %v457_v15 = vld [vmem:[#allocation8 + $0x28] sm:$0xff]   ;;  %v458_v16 = vld [vmem:[#allocation8 + $0x30] sm:$0xff]   ;;  %v459_v17 = vld [vmem:[#allocation8 + $0x38] sm:$0xff]  }
  0x61   :  { %v352_v18 = vld [vmem:[#allocation7] ss:$0 sm:$0xff]  ;;  %v364_v34 = vld [vmem:[#allocation10] ss:$0 sm:$0xff]  ;;  %p585_p1 = por %p584_p0, %p583_p13 }
  0x62   :  { %394 = vmatpush3.bf16.msra.mxu0 %v444_v2 }
  0x63   :  { %395 = vmatprep.subr.bf16.mxu0 %v615_v0  ;;  %414 = vmatpush3.bf16.msra.mxu1 %v453_v11  ;;  %p586_p2 = pnand %p585_p1, %p579_p12 }
  0x64   :  { %415 = vmatprep.subr.bf16.mxu1 %v615_v0 }
  0x66   :  { %396 = vmatpush3.bf16.msra.mxu0 %v445_v3 }
  0x67   :  { %397 = vmatprep.subr.bf16.mxu0 %v615_v0  ;;  %416 = vmatpush3.bf16.msra.mxu1 %v454_v12 }
  0x68   :  { %417 = vmatprep.subr.bf16.mxu1 %v615_v0 }
  0x6a   :  { %398 = vmatpush3.bf16.msra.mxu0 %v446_v4 }
  0x6b   :  { %399 = vmatprep.subr.bf16.mxu0 %v615_v0  ;;  %418 = vmatpush3.bf16.msra.mxu1 %v455_v13 }
  0x6c   :  { %419 = vmatprep.subr.bf16.mxu1 %v615_v0 }
  0x6e   :  { %400 = vmatpush3.bf16.msra.mxu0 %v447_v5 }
  0x6f   :  { %401 = vmatprep.subr.bf16.mxu0 %v615_v0  ;;  %420 = vmatpush3.bf16.msra.mxu1 %v456_v14 }
  0x70   :  { %421 = vmatprep.subr.bf16.mxu1 %v615_v0 }
  0x72   :  { %402 = vmatpush3.bf16.msra.mxu0 %v448_v6 }
  0x73   :  { %403 = vmatprep.subr.bf16.mxu0 %v615_v0  ;;  %422 = vmatpush3.bf16.msra.mxu1 %v457_v15 }
  0x74   :  { %423 = vmatprep.subr.bf16.mxu1 %v615_v0 }
  0x76   :  { %404 = vmatpush3.bf16.msra.mxu0 %v449_v7 }
  0x77   :  { %405 = vmatprep.subr.bf16.mxu0 %v615_v0  ;;  %424 = vmatpush3.bf16.msra.mxu1 %v458_v16 }
  0x78   :  { %425 = vmatprep.subr.bf16.mxu1 %v615_v0 }
  0x7a   :  { %406 = vmatpush3.bf16.msra.mxu0 %v450_v8 }
  0x7b   :  { %426 = vmatpush3.bf16.msra.mxu1 %v459_v17 }
  0x7d   :  { %408 = vmatmul.mubr.bf16.vlgmr.msra.gmra.mrb[0].mxu0 %v451_v9 }
 0x150   :  { %v199_v19 = vpop.f32.mrb[0].mxu0 }
 0x151   :  { %v200_v20 = vadd.f32 %v352_v18, %v199_v19  ;;  %v409_v21 = vpop.f32.mrb[1].mxu0 }
 0x152   :  { %v202_v22 = vpop.f32.mrb[2].mxu0 }
 0x153   :  { %v362_v23 = vmul.f32 -1.442695, %v200_v20  ;;  %v203_v24 = vadd.f32 %v352_v18, %v202_v22  ;;  %v410_v25 = vpop.f32.mrb[3].mxu0 }
 0x155   :  { %460 = vpow2.f32 %v362_v23  ;;  %v363_v26 = vmul.f32 -1.442695, %v203_v24 }
 0x157   :  { %462 = vpow2.f32 %v363_v26 }
 0x15f   :  { %v461_v27 = vpop.eup %460 }
 0x160   :  { %v212_v28 = vadd.f32 1.0, %v461_v27 }
 0x161   :  { %v463_v29 = vpop.eup %462 }
 0x162   :  { %v213_v30 = vadd.f32 1.0, %v463_v29  ;;  %464 = vrcp.f32 %v212_v28 }
 0x164   :  { %466 = vrcp.f32 %v213_v30 }
 0x16c   :  { %v465_v31 = vpop.eup %464 }
 0x16e   :  { %v467_v32 = vpop.eup %466 }
 0x16f   :  { %v218_v33 = vpack.c.bf16 %v467_v32, %v465_v31 }
 0x171   :  { %428 = vmatmul.mubr.bf16.vlgmr.msra.gmra.mrb[0].mxu1 %v218_v33 }
 0x244   :  { %v324_v35 = vpop.f32.mrb[0].mxu1 }
 0x245   :  { %v325_v36 = vadd.f32 %v364_v34, %v324_v35  ;;  %v429_v37 = vpop.f32.mrb[1].mxu1 }
 0x246   :  { %v327_v38 = vpop.f32.mrb[2].mxu1 }
 0x247   :  { %331 = vst [vmem:[#allocation11] sm:$0xff] %v325_v36  ;;  %v328_v39 = vadd.f32 %v364_v34, %v327_v38  ;;  %v430_v40 = vpop.f32.mrb[3].mxu1 }
 0x249   :  { %332 = vst [vmem:[#allocation11 + $0x8] sm:$0xff] %v328_v39 }
 0x24a   :  { %589 = shalt.err (!%p586_p2)
}
 0x24b   :  { %s590_s7 = scalar_lea.hbm %s743_s5, 256 }
 0x24c   :  { %p591_p3 = scmp.ne.s32.totalorder %s743_s5, %s590_s7  ;;  %p594_p4 = scmp.lt.u32.totalorder %s590_s7, %s743_s5 }
 0x24e   :  { %p596_p5 = pnand %p594_p4, %p591_p3 }
 0x250   :  { %599 = shalt.err (!%p596_p5)
}
 0x251   :  { %s618_s12 = smov 128   ;;  %s619_s13 = smov 8  }
 0x252   :  { %344 = dma.vmem_to_hbm [thread:$0]  %s339_s28, 256, %s743_s5, [#allocation4], %s618_s12, %s618_s12, %s619_s13  }
 0x253   :  { %606 = dma.done.wait [#allocation4], 256  }
 0x254   :  { %607 = vsyncadd [#allocation4], 4294967040 }
 0x255   :  { %348 = vsyncpa [#allocation3], 1 }
 0x256   :  { %349 = vsyncpa [#allocation6], 1 }
 0x257   :  { %350 = vsyncpa [#allocation9], 1 }
 0x258   :  { %351 = vsyncpa [#allocation4], 1 }

</bundles_post_ra>
